<compile_context>
chip_gen: v7x
topology: tpu7x:2x2x1
jax: 0.10.0
libtpu: 0.0.40
codegen_flags: <defaults>
</compile_context>

<pallas_src>
import numpy as np
import jax
import jax.numpy as jnp
from jax import lax
from jax.experimental import pallas as pl
from jax.experimental.pallas import tpu as pltpu


# ----------------------------------------------------------------------------
# Kernel construction (straight port of the numpy `get_kernel` from dip_code)
# ----------------------------------------------------------------------------
def get_kernel(factor, kernel_type, phase, kernel_width, support=None, sigma=None):
    assert kernel_type in ['lanczos', 'gauss', 'box']
    if phase == 0.5 and kernel_type != 'box':
        kernel = np.zeros([kernel_width - 1, kernel_width - 1])
    else:
        kernel = np.zeros([kernel_width, kernel_width])
    if kernel_type == 'box':
        assert phase == 0.5, 'Box filter is always half-phased'
        kernel[:] = 1.0 / (kernel_width * kernel_width)
    elif kernel_type == 'gauss':
        assert sigma, 'sigma is not specified'
        assert phase != 0.5, 'phase 1/2 for gauss not implemented'
        center = (kernel_width + 1.0) / 2.0
        sigma_sq = sigma * sigma
        for i in range(1, kernel.shape[0] + 1):
            for j in range(1, kernel.shape[1] + 1):
                di = (i - center) / 2.0
                dj = (j - center) / 2.0
                kernel[i - 1][j - 1] = np.exp(-(di * di + dj * dj) / (2 * sigma_sq))
                kernel[i - 1][j - 1] = kernel[i - 1][j - 1] / (2.0 * np.pi * sigma_sq)
    elif kernel_type == 'lanczos':
        assert support, 'support is not specified'
        center = (kernel_width + 1) / 2.0
        for i in range(1, kernel.shape[0] + 1):
            for j in range(1, kernel.shape[1] + 1):
                if phase == 0.5:
                    di = abs(i + 0.5 - center) / factor
                    dj = abs(j + 0.5 - center) / factor
                else:
                    di = abs(i - center) / factor
                    dj = abs(j - center) / factor
                val = 1
                if di != 0:
                    val = val * support * np.sin(np.pi * di) * np.sin(np.pi * di / support)
                    val = val / (np.pi * np.pi * di * di)
                if dj != 0:
                    val = val * support * np.sin(np.pi * dj) * np.sin(np.pi * dj / support)
                    val = val / (np.pi * np.pi * dj * dj)
                kernel[i - 1][j - 1] = val
    else:
        assert False, 'wrong method name'
    kernel /= kernel.sum()
    return kernel


# ----------------------------------------------------------------------------
# Host-side helpers: separable split + banded strided resampling matrices
# ----------------------------------------------------------------------------
def _separable_1d(kernel2d):
    """Split the (K, K) resampling kernel into 1-D row/col factors (rank-1)."""
    k = np.asarray(kernel2d, dtype=np.float64)
    u, s, vt = np.linalg.svd(k)
    g_row = u[:, 0] * s[0]
    g_col = vt[0, :]
    # All Downsampler kernels (box/gauss/lanczos) are exactly rank-1.
    # TODO(synk): non-separable kernels would need a K^2 tap-wise fallback.
    assert np.allclose(np.outer(g_row, g_col), k, atol=1e-10), \
        "resampling kernel is not separable"
    return g_row, g_col


def _build_resample_matrix(g, n_in, n_out, stride, pad):
    """A[o, i] s.t. (A @ x) == strided valid correlation of edge-padded x."""
    K = g.shape[0]
    A = np.zeros((n_out, n_in), dtype=np.float64)
    for o in range(n_out):
        for t in range(K):
            src = o * stride + t - pad
            src = min(max(src, 0), n_in - 1)   # replication pad folded in
            A[o, src] += g[t]
    return A


def _round_up(v, m):
    return ((v + m - 1) // m) * m


def _pick_channel_block(C, H, W, Ho, Wo_pad, budget_bytes=40 << 20):
    """Largest divisor of C whose double-buffered per-step VMEM fits budget."""
    def per_step_bytes(cb):
        in_blk = cb * H * W * 4
        out_blk = cb * Ho * Wo_pad * 4
        mats = (Ho * H + W * Wo_pad) * 4
        inter = cb * H * Wo_pad * 4 + cb * Ho * H * 4      # t + broadcast A_h
        return 2 * (in_blk + out_blk) + 2 * mats + inter + (2 << 20)
    for cb in range(C, 0, -1):
        if C % cb == 0 and per_step_bytes(cb) <= budget_bytes:
            return cb, per_step_bytes(cb)
    return 1, per_step_bytes(1)


# ----------------------------------------------------------------------------
# Pallas forward pass
# ----------------------------------------------------------------------------
def downsampler_pallas(x, kernel2d, bias, factor, preserve_size=True,
                       mxu_input_dtype=None):
    """x: (N, C, H, W) float32. kernel2d: (K, K). bias: (C,). stride = factor.

    mxu_input_dtype: set to jnp.bfloat16 on v6e/v7x for faster MXU / less VMEM
    (accumulation stays f32); keep None (f32) on v5e or for tight tolerances.
    """
    N, C, H, W = (int(d) for d in x.shape)
    K = int(kernel2d.shape[0])
    S = int(factor)

    if preserve_size:
        p = (K - 1) // 2 if (K % 2 == 1) else (K - S) // 2
    else:
        p = 0
    Hp, Wp = H + 2 * p, W + 2 * p
    Ho = (Hp - K) // S + 1
    Wo = (Wp - K) // S + 1
    assert Ho >= 1 and Wo >= 1, "input too small for this kernel/stride"

    # Lane-dense output: pad Wo up to a multiple of 128 via zero columns in A_w.
    Wo_pad = _round_up(Wo, 128)

    g_row, g_col = _separable_1d(kernel2d)
    A_h_np = _build_resample_matrix(g_row, H, Ho, S, p)            # (Ho, H)
    A_w_np = _build_resample_matrix(g_col, W, Wo, S, p)            # (Wo, W)
    A_wT_np = np.zeros((W, Wo_pad), dtype=np.float64)
    A_wT_np[:, :Wo] = A_w_np.T                                     # zero-padded cols
    A_h = jnp.asarray(A_h_np, dtype=jnp.float32)
    A_wT = jnp.asarray(A_wT_np, dtype=jnp.float32)

    bias_np = np.asarray(bias, dtype=np.float32)
    add_bias = bool(np.any(bias_np != 0.0))

    CB, per_step = _pick_channel_block(C, H, W, Ho, Wo_pad)
    grid = (N, C // CB)

    vmem_limit = int(min(max(per_step + (4 << 20), 32 << 20), 64 << 20))

    def kernel_fn(*refs):
        if add_bias:
            x_ref, ah_ref, awt_ref, b_ref, o_ref = refs
        else:
            x_ref, ah_ref, awt_ref, o_ref = refs
        b_ref = refs[3] if add_bias else None

        xs = x_ref[...]                                  # (CB, H, W)
        ah = ah_ref[...]                                 # (Ho, H)
        awt = awt_ref[...]                               # (W, Wo_pad)
        if mxu_input_dtype is not None:
            xs = xs.astype(mxu_input_dtype)
            ah = ah.astype(mxu_input_dtype)
            awt = awt.astype(mxu_input_dtype)

        # --- W-contraction: one fused matmul, M = CB*H rows keeps MXU full ---
        if H % 8 == 0:
            t = lax.dot_general(
                xs.reshape(CB * H, W), awt,
                dimension_numbers=(((1,), (0,)), ((), ())),
                preferred_element_type=jnp.float32)      # (CB*H, Wo_pad)
            t = t.reshape(CB, H, Wo_pad)
        else:
            # Sublane-unfriendly reshape -> use a batched matmul instead.
            awt_b = jnp.broadcast_to(awt[None], (CB, W, Wo_pad))
            t = lax.dot_general(
                xs, awt_b,
                dimension_numbers=(((2,), (1,)), ((0,), (0,))),
                preferred_element_type=jnp.float32)      # (CB, H, Wo_pad)
        if mxu_input_dtype is not None:
            t = t.astype(mxu_input_dtype)

        # --- H-contraction: single batched dot_general over the block ------
        ah_b = jnp.broadcast_to(ah[None], (CB, Ho, H))
        y = lax.dot_general(
            ah_b, t,
            dimension_numbers=(((2,), (1,)), ((0,), (0,))),
            preferred_element_type=jnp.float32)          # (CB, Ho, Wo_pad)

        if add_bias:
            y = y + b_ref[...]                           # (CB, 1, Wo_pad) bcast over Ho

        o_ref[...] = y.astype(o_ref.dtype)               # one lane-dense store

    in_specs = [
        pl.BlockSpec((None, CB, H, W), lambda n, cb: (n, cb, 0, 0)),
        pl.BlockSpec((Ho, H), lambda n, cb: (0, 0)),       # constant -> DMA'd once
        pl.BlockSpec((W, Wo_pad), lambda n, cb: (0, 0)),   # constant -> DMA'd once
    ]
    operands = [x, A_h, A_wT]
    if add_bias:
        bias_planes = jnp.broadcast_to(
            jnp.asarray(bias_np, dtype=jnp.float32)[:, None, None], (C, 1, Wo_pad))
        in_specs.append(pl.BlockSpec((CB, 1, Wo_pad), lambda n, cb: (cb, 0, 0)))
        operands.append(bias_planes)

    out_pad = pl.pallas_call(
        kernel_fn,
        out_shape=jax.ShapeDtypeStruct((N, C, Ho, Wo_pad), x.dtype),
        grid=grid,
        in_specs=in_specs,
        out_specs=pl.BlockSpec((None, CB, Ho, Wo_pad), lambda n, cb: (n, cb, 0, 0)),
        compiler_params=pltpu.CompilerParams(
            dimension_semantics=("parallel", "parallel"),
            vmem_limit_bytes=vmem_limit),
    )(*operands)

    if Wo_pad != Wo:
        return out_pad[..., :Wo]
    return out_pad


# ----------------------------------------------------------------------------
# Plain-JAX reference (mirrors the PyTorch Conv2d construction exactly)
# ----------------------------------------------------------------------------
def downsampler_reference(x, kernel2d, bias, factor, preserve_size=True):
    N, C, H, W = x.shape
    K = int(kernel2d.shape[0])
    S = int(factor)
    if preserve_size:
        p = (K - 1) // 2 if (K % 2 == 1) else (K - S) // 2
        xp = jnp.pad(x, ((0, 0), (0, 0), (p, p), (p, p)), mode="edge")
    else:
        xp = x
    w = jnp.zeros((C, C, K, K), x.dtype)
    idx = jnp.arange(C)
    w = w.at[idx, idx].set(kernel2d.astype(x.dtype))
    out = lax.conv_general_dilated(
        xp, w, window_strides=(S, S), padding="VALID",
        dimension_numbers=("NCHW", "OIHW", "NCHW"))
    return out + bias[None, :, None, None]


if __name__ == "__main__":
    # Module config: Downsampler(n_planes=4, factor=4, kernel_type='lanczos2',
    #                            phase=0, preserve_size=True)
    n_planes = 4
    factor = 4
    support = 2
    kernel_width = 4 * factor + 1          # 17 -> 17x17 lanczos2 kernel
    kernel_np = get_kernel(factor, 'lanczos', 0, kernel_width, support=support)

    kernel2d = jnp.asarray(kernel_np, dtype=jnp.float32)
    bias = jnp.zeros((n_planes,), dtype=jnp.float32)   # Conv2d bias is zeroed in DIP

    key = jax.random.PRNGKey(0)
    x = jax.random.normal(key, (2, n_planes, 16, 16), dtype=jnp.float32)

    out = downsampler_pallas(x, kernel2d, bias, factor, preserve_size=True)
    out = jax.block_until_ready(out)

    ref = downsampler_reference(x, kernel2d, bias, factor, preserve_size=True)
    ref = jax.block_until_ready(ref)

    assert out.shape == (2, n_planes, 4, 4), out.shape
    np.testing.assert_allclose(np.asarray(out), np.asarray(ref),
                               rtol=1e-4, atol=1e-4)
    print("KERNEL_OK")
</pallas_src>

<mosaic_0001>
module attributes {stable_mosaic.version = 11 : i64} {
  func.func @kernel_fn(%arg0: i32, %arg1: i32, %arg2: memref<1x4x16x16xf32, #tpu.memory_space<vmem>>, %arg3: memref<4x16xf32, #tpu.memory_space<vmem>>, %arg4: memref<16x128xf32, #tpu.memory_space<vmem>>, %arg5: memref<1x4x4x128xf32, #tpu.memory_space<vmem>>) attributes {dimension_semantics = [#tpu.dimension_semantics<parallel>, #tpu.dimension_semantics<parallel>], iteration_bounds = array<i64: 2, 1>, scalar_prefetch = 0 : i64, scratch_operands = 0 : i64, tpu.core_type = #tpu.core_type<tc>, window_params = [{transform_indices = @transform_0, window_bounds = array<i64: 1, 4, 16, 16>}, {pipeline_mode = #tpu.pipeline_mode<synchronous>, transform_indices = @transform_1, window_bounds = array<i64: 4, 16>}, {pipeline_mode = #tpu.pipeline_mode<synchronous>, transform_indices = @transform_2, window_bounds = array<i64: 16, 128>}, {transform_indices = @transform_3, window_bounds = array<i64: 1, 4, 4, 128>}]} {
    %c0 = arith.constant 0 : index
    %c0_0 = arith.constant 0 : index
    %c0_1 = arith.constant 0 : index
    %c0_2 = arith.constant 0 : index
    %0 = vector.load %arg2[%c0, %c0_0, %c0_1, %c0_2] : memref<1x4x16x16xf32, #tpu.memory_space<vmem>>, vector<1x4x16x16xf32>
    %1 = vector.shape_cast %0 : vector<1x4x16x16xf32> to vector<4x16x16xf32>
    %c0_3 = arith.constant 0 : index
    %c0_4 = arith.constant 0 : index
    %2 = vector.load %arg3[%c0_3, %c0_4] : memref<4x16xf32, #tpu.memory_space<vmem>>, vector<4x16xf32>
    %c0_5 = arith.constant 0 : index
    %c0_6 = arith.constant 0 : index
    %3 = vector.load %arg4[%c0_5, %c0_6] : memref<16x128xf32, #tpu.memory_space<vmem>>, vector<16x128xf32>
    %4 = vector.shape_cast %1 : vector<4x16x16xf32> to vector<64x16xf32>
    %cst = arith.constant dense<0.000000e+00> : vector<64x128xf32>
    %5 = tpu.matmul %4, %3, %cst {dimension_numbers = #tpu.dot_dimension_numbers<[1], [0], [0], [1], [0, 0, 1, 1], [], []>} : vector<64x16xf32>, vector<16x128xf32>, vector<64x128xf32> -> vector<64x128xf32>
    %6 = vector.shape_cast %5 : vector<64x128xf32> to vector<4x16x128xf32>
    %7 = vector.shape_cast %2 : vector<4x16xf32> to vector<1x4x16xf32>
    %8 = vector.shape_cast %7 : vector<1x4x16xf32> to vector<1x4x16xf32>
    %9 = vector.broadcast %8 : vector<1x4x16xf32> to vector<4x4x16xf32>
    %cst_7 = arith.constant dense<0.000000e+00> : vector<4x4x128xf32>
    %10 = tpu.matmul %9, %6, %cst_7 {dimension_numbers = #tpu.dot_dimension_numbers<[2], [1], [1], [2], [0, 0, 0, 1, 1, 2], [0], [0]>} : vector<4x4x16xf32>, vector<4x16x128xf32>, vector<4x4x128xf32> -> vector<4x4x128xf32>
    %c0_8 = arith.constant 0 : index
    %c0_9 = arith.constant 0 : index
    %c0_10 = arith.constant 0 : index
    %c0_11 = arith.constant 0 : index
    %11 = vector.load %arg5[%c0_8, %c0_9, %c0_10, %c0_11] : memref<1x4x4x128xf32, #tpu.memory_space<vmem>>, vector<1x4x4x128xf32>
    %12 = vector.shape_cast %11 : vector<1x4x4x128xf32> to vector<4x4x128xf32>
    %13 = vector.shape_cast %10 : vector<4x4x128xf32> to vector<1x4x4x128xf32>
    tpu.vector_store %arg5[%c0_8, %c0_9, %c0_10, %c0_11], %13 {strides = array<i32>} : memref<1x4x4x128xf32, #tpu.memory_space<vmem>>, vector<1x4x4x128xf32>,
    return
  }
  func.func @transform_0(%arg0: i32, %arg1: i32) -> (i32, i32, i32, i32) {
    %c0_i32 = arith.constant 0 : i32
    %c0_i32_0 = arith.constant 0 : i32
    %c0_i32_1 = arith.constant 0 : i32
    return %arg0, %arg1, %c0_i32, %c0_i32_0 : i32, i32, i32, i32
  }
  func.func @transform_1(%arg0: i32, %arg1: i32) -> (i32, i32) {
    %c0_i32 = arith.constant 0 : i32
    %c0_i32_0 = arith.constant 0 : i32
    %c0_i32_1 = arith.constant 0 : i32
    return %c0_i32, %c0_i32_0 : i32, i32
  }
  func.func @transform_2(%arg0: i32, %arg1: i32) -> (i32, i32) {
    %c0_i32 = arith.constant 0 : i32
    %c0_i32_0 = arith.constant 0 : i32
    %c0_i32_1 = arith.constant 0 : i32
    return %c0_i32, %c0_i32_0 : i32, i32
  }
  func.func @transform_3(%arg0: i32, %arg1: i32) -> (i32, i32, i32, i32) {
    %c0_i32 = arith.constant 0 : i32
    %c0_i32_0 = arith.constant 0 : i32
    %c0_i32_1 = arith.constant 0 : i32
    return %arg0, %arg1, %c0_i32, %c0_i32_0 : i32, i32, i32, i32
  }
}

</mosaic_0001>

<bundles_post_ra>
// kernel: tpu_custom_call.1
= control target key start
LH: loop header
LB: loop body
LE: loop exit
PB: predicated region body
PF: predicated region fallthrough
CT: control target
= control target key end

     0   :  { %8 = vsyncpa [#allocation3], 0  ;;  %s1474_s0 = inlined_call_operand.hbm [shape: f32[2,4,16,16], index: 0, kind: input, shape index: {}]   ;;  %s1475_s1 = inlined_call_operand.hbm [shape: f32[4,16], index: 1, kind: input, shape index: {}]   ;;  %s1476_s2 = inlined_call_operand.hbm [shape: f32[16,128], index: 2, kind: input, shape index: {}]   ;;  %s1477_s3 = inlined_call_operand.hbm [shape: f32[2,4,4,128], index: 3, kind: output, shape index: {}]  }
   0x1   :  { %10 = vsyncpa [#allocation3 + $0x1], 0 }
   0x2   :  { %11 = vsyncpa [#allocation6], 0 }
   0x3   :  { %12 = vsyncpa [#allocation4], 0 }
   0x4   :  { %14 = vsyncpa [#allocation4 + $0x1], 0  ;;  %s1197_s12 = smov 0   ;;  %s1199_s13 = smov 0  }
   0x5   :  { %s1201_s14 = smov 0   ;;  %s1203_s15 = smov 0  }
   0x6   :  { %s1205_s16 = smov 0   ;;  %s1207_s17 = smov 0  }
   0x7 LB: > { %s787_s18 = sadd.s32 4294967295, %s1164_s17   ;;  %s788_s19 = sadd.s32 4294967294, %s1164_s17   ;;  %s1164_s17 = sphi %s1207_s17, %s20_s17   ;;  %s1160_s16 = sphi %s1205_s16, %s1505_s16   ;;  %s1156_s15 = sphi %s1203_s15, %s1504_s15   ;;  %s1152_s14 = sphi %s1201_s14, %s1503_s14   ;;  %s1148_s13 = sphi %s1199_s13, %s1502_s13   ;;  %s1144_s12 = sphi %s1197_s12, %s1501_s12  }
   0x8   : > { %p48_p0 = scmp.ne.s32.totalorder %s1152_s14, %s1148_s13  ;;  %p49_p1 = scmp.eq.s32.totalorder %s1164_s17, 0 }
   0x9   : > { %p54_p2 = scmp.ne.s32.totalorder %s1148_s13, %s1144_s12  ;;  %p1234_p3 = scmp.eq.s32.totalorder %s787_s18, 0 }
   0xa   : > { %p122_p4 = scmp.eq.s32.totalorder %s787_s18, 1  ;;  %p1238_p5 = por %p49_p1, %p48_p0 }
   0xb   : > { %s1484_s20 = scalar_select %p1234_p3, 1, 0 }
   0xc   : > { %p128_p6 = scmp.eq.s32.totalorder %s788_s19, 1  ;;  %p1244_p7 = por %p1234_p3, %p54_p2 }
   0xd   : > { %p1248_p8 = por %p122_p4, %p48_p0  ;;  %p789_p10 = scmp.ge.s32.totalorder %s1164_s17, 1 }
   0xe   : > { %s1486_s22 = scalar_select %p1244_p7, 1, 0 }
   0xf   : > { %s1487_s23 = scalar_select %p1248_p8, 1, 0 }
  0x10   : > { %p1252_p9 = por %p128_p6, %p54_p2  ;;  %p135_p11 = scmp.lt.s32.totalorder %s1164_s17, 3 }
  0x11   : > { %s1166_s26 = smov [#allocation5]   ;;  %p931_p1 = scmp.lt.s32.totalorder %s1164_s17, 2 }
  0x12   : > { %s1488_s24 = scalar_select %p1252_p9, 1, 0 }
  0x13   : > { %p1259_p13 = pnand %p789_p10, %p135_p11  ;;  %s148_s27 = sshll.u32 %s1166_s26, 4  ;;  %s149_s27 = int_to_ptr.vmem [resolvable:$true] %s148_s27 }
  0x14   : > { %p1268_p4 = pnand %p931_p1, %p1238_p5  ;;  %s1167_s29 = smov [#allocation7]  }
  0x15   : > { %s1489_s25 = scalar_select %p1259_p13, 1, 0 }
  0x16   : > { %p914_p0 = pneg %p1259_p13  ;;  %s158_s30 = sshll.u32 %s1167_s29, 4  ;;  %s1278_s30 = int_to_ptr.vmem [resolvable:$true] %s158_s30 }
  0x17   : > { %s1490_s28 = scalar_select %p1268_p4, 1, 0 }
  0x18   : > { %p1274_p2 = pnand %p914_p0, %p1234_p3  ;;  %s992_s7 = scalar_lea.hbm %s1475_s1, 64 }
  0x19   : > { %p993_p5 = scmp.ne.s32.totalorder %s1475_s1, %s992_s7  ;;  %p999_p1 = scmp.lt.u32.totalorder %s992_s7, %s1475_s1 }
  0x1a   : > { %p994_p6 = pneg %p1274_p2 }
  0x1c   : > { %p995_p10 = pnand %p994_p6, %p993_p5 }
  0x1e   : > { %p996_p11 = pneg %p995_p10 }
  0x20   : > { %p1001_p0 = pnand %p999_p1, %p996_p11 }
  0x22   : > { %1004 = shalt.err (!%p1001_p0)
}
  0x23   : > { %s1005_s18 = scalar_lea.vmem %s149_s27, 64  ;;  %p1013_p3 = scmp.lt.s32.totalorder %s149_s27, %s149_s27 }
  0x24   : > { %p1006_p12 = scmp.ne.s32.totalorder %s149_s27, %s1005_s18  ;;  %p1014_p7 = scmp.lt.s32.totalorder %s1005_s18, %s1005_s18 }
  0x26   : > { %p1008_p9 = pnand %p1006_p12, %p994_p6  ;;  %p1015_p13 = por %p1014_p7, %p1013_p3 }
  0x28   : > { %p1009_p8 = pneg %p1008_p9 }
  0x2a   : > { %p1016_p4 = pnand %p1015_p13, %p1009_p8 }
  0x2c   : > { %1019 = shalt.err (!%p1016_p4)
}
  0x2d   : > { %917 = dma.hbm_to_vmem [thread:$0]  (!%p1274_p2), %s1475_s1, 64, %s149_s27, [#allocation6]  }
  0x2e   : > { %s1020_s5 = scalar_lea.hbm %s1476_s2, 256 }
  0x2f   : > { %p1021_p9 = scmp.ne.s32.totalorder %s1476_s2, %s1020_s5  ;;  %p1027_p8 = scmp.lt.u32.totalorder %s1020_s5, %s1476_s2 }
  0x31   : > { %p1023_p3 = pnand %p1021_p9, %p994_p6 }
  0x33   : > { %p1024_p7 = pneg %p1023_p3 }
  0x35   : > { %p1029_p12 = pnand %p1027_p8, %p1024_p7 }
  0x37   : > { %1032 = shalt.err (!%p1029_p12)
}
  0x38   : > { %s1033_s27 = scalar_lea.vmem %s1278_s30, 256  ;;  %p1041_p10 = scmp.lt.s32.totalorder %s1278_s30, %s1278_s30 }
  0x39   : > { %p1034_p13 = scmp.ne.s32.totalorder %s1278_s30, %s1033_s27  ;;  %p1042_p11 = scmp.lt.s32.totalorder %s1033_s27, %s1033_s27 }
  0x3b   : > { %p1036_p4 = pnand %p1034_p13, %p994_p6  ;;  %p1043_p1 = por %p1042_p11, %p1041_p10 }
  0x3d   : > { %p1037_p5 = pneg %p1036_p4 }
  0x3f   : > { %p1044_p0 = pnand %p1043_p1, %p1037_p5 }
  0x41   : > { %1047 = shalt.err (!%p1044_p0)
}
  0x42   : > { %s1168_s10 = smov 128   ;;  %s1169_s11 = smov 8  }
  0x43   : > { %920 = dma.hbm_to_vmem [thread:$0]  (!%p1274_p2), %s1476_s2, 256, %s1278_s30, [#allocation6], %s1168_s10, %s1168_s10, %s1169_s11  }
  0x44   : > { %s172_s21 = sand.u32 1, %s1152_s14   ;;  %s32_s26 = sadd.s32 1, %s1160_s16 }
  0x45   : > { %s793_s29 = sshll.u32 %s172_s21, 6  ;;  %p34_p6 = scmp.ge.s32.totalorder %s32_s26, 2 }
  0x46   : > { %s818_s5 = sshll.u32 %s1160_s16, 10  ;;  %s176_s6 = scalar_lea.vmem [#allocation2], %s793_s29 }
  0x47   : > { %s186_s7 = sshll.u32 %s176_s6, 4  ;;  %s1507_s26 = smov (%p34_p6, %s32_s26), 0  ;;  %s1340_s7 = int_to_ptr.vmem [resolvable:$true] %s186_s7 }
  0x48   : > { %s1338_s9 = scalar_lea.hbm %s1474_s0, %s818_s5  ;;  %s36_s27 = ssub.s32 %s1160_s16, %s1507_s26 }
  0x49   : > { %p1345_p2 = scmp.eq.s32.totalorder %s36_s27, 0  ;;  %s1349_s19 = scalar_lea.sflag [#allocation3], %s172_s21 }
  0x4a   : > { %s1048_s29 = scalar_lea.hbm %s1338_s9, 1024  ;;  %p1493_p3 = scmp.ne.s32.totalorder %s1490_s28, 0 }
  0x4b   : > { %p1049_p9 = scmp.ne.s32.totalorder %s1338_s9, %s1048_s29  ;;  %s1053_s8 = scalar_lea.hbm %s1474_s0, 2048 }
  0x4c   : > { %p1050_p7 = pneg %p1493_p3  ;;  %p1054_p13 = scmp.lt.u32.totalorder %s1338_s9, %s1474_s0 }
  0x4d   : > { %p1055_p4 = scmp.lt.u32.totalorder %s1053_s8, %s1048_s29  ;;  %p1057_p10 = scmp.lt.u32.totalorder %s1048_s29, %s1338_s9 }
  0x4e   : > { %p1051_p8 = pnand %p1050_p7, %p1049_p9 }
  0x4f   : > { %p1056_p5 = por %p1055_p4, %p1054_p13 }
  0x50   : > { %p1052_p12 = pneg %p1051_p8 }
  0x51   : > { %p1058_p11 = por %p1057_p10, %p1056_p5 }
  0x53   : > { %p1059_p1 = pnand %p1058_p11, %p1052_p12 }
  0x55   : > { %1062 = shalt.err (!%p1059_p1)
}
  0x56   : > { %s1063_s21 = scalar_lea.vmem %s1340_s7, 1024  ;;  %s1170_s27 = smov [#allocation2]  }
  0x57   : > { %p1064_p0 = scmp.ne.s32.totalorder %s1340_s7, %s1063_s21  ;;  %s1068_s5 = sshll.u32 %s1170_s27, 4  ;;  %s1069_s5 = int_to_ptr.vmem [resolvable:$false] %s1068_s5 }
  0x58   : > { %s1070_s30 = scalar_lea.vmem %s1069_s5, 2048  ;;  %p1071_p8 = scmp.lt.s32.totalorder %s1340_s7, %s1069_s5 }
  0x59   : > { %p1066_p6 = pnand %p1064_p0, %p1050_p7  ;;  %p1072_p13 = scmp.lt.s32.totalorder %s1070_s30, %s1063_s21 }
  0x5b   : > { %p1067_p9 = pneg %p1066_p6  ;;  %p1073_p4 = por %p1072_p13, %p1071_p8 }
  0x5d   : > { %p1074_p5 = pnand %p1073_p4, %p1067_p9 }
  0x5f   : > { %1077 = shalt.err (!%p1074_p5)
}
  0x60   : > { %924 = dma.hbm_to_vmem [thread:$0]  (!%p1493_p3), %s1338_s9, 1024, %s1340_s7, %s1349_s19, %s1168_s10, %s1168_s10, %s1169_s11  }
  0x61   : > { %s1494_s29 = sadd.s32 1, %s1152_s14  ;;  %p1495_p7 = scmp.ne.s32.totalorder %s1489_s25, 0 }
  0x62   : > { %s1385_s6 = scalar_select %p1345_p2, %s1152_s14, %s1494_s29  }
  0x63   : > { %198 = sbr.rel (%p1495_p7) target bundleno = 574 (0x23e), region = 32  ;;  %s1390_s28 = sand.u32 (!%p1495_p7), 1, %s1148_s13  }
  0x64   : > { %s797_s8 = sshll.u32 (!%p1495_p7), %s1390_s28, 6  ;;  %s201_s4 = scalar_lea.sflag (!%p1495_p7), [#allocation3], %s1390_s28 }
  0x65   : > { %s204_s21 = scalar_lea.vmem (!%p1495_p7), [#allocation2], %s797_s8  ;;  %p1496_p12 = scmp.ne.s32.totalorder (!%p1495_p7), %s1486_s22, 0 }
  0x6a   : > { %1131 = dma.done.wait (%p1496_p12), %s201_s4, 1024  }
  0x6b   : > { %1133 = vsyncadd (%p1496_p12), %s201_s4, 4294966272  ;;  %p1497_p2 = scmp.ne.s32.totalorder %s1484_s20, 0 }
  0x6d   : > { %1135 = dma.done.wait (%p1497_p2), [#allocation6], 320  }
  0x6e   : > { %1137 = vsyncadd (%p1497_p2), [#allocation6], 4294966976  ;;  %vm248_vm0 = vcmask 130048   ;;  %v246_v0 = vld [vmem:[#allocation7] sm:$0xff]  ;;  %v247_v1 = vld [vmem:[#allocation7 + $0x8] sm:$0xff]  ;;  %v1171_v11 = vmov 0.0|0.0  }
  0x6f   : > { %v237_v2 = vld [vmem:[%s204_s21] sm:$0xff]  ;;  %v886_v3 = vpack.c.bf16 %v247_v1, %v246_v0  ;;  %v238_v4 = vld [vmem:[%s204_s21 + $0x8] sm:$0xff]  ;;  %v239_v5 = vld [vmem:[%s204_s21 + $0x10] sm:$0xff]  ;;  %890 = vmatprep.subr.bf16.mxu1 %v1171_v11  ;;  %vm1172_vm1 = vmmov 0   ;;  %v1173_v12 = vmov 0.0   ;;  %s800_s20 = sshll.u32 %s1390_s28, 4 }
  0x70   : > { %846 = vmatprep.mubr.msk.f32.mxu0 %vm248_vm0, %v237_v2  ;;  %v240_v6 = vld [vmem:[%s204_s21 + $0x18] sm:$0xff]  ;;  %v241_v7 = vld [vmem:[%s204_s21 + $0x20] sm:$0xff]  ;;  %v242_v8 = vld [vmem:[%s204_s21 + $0x28] sm:$0xff]  ;;  %862 = vmatprep.mubr.msk.f32.mxu1 %vm1172_vm1, %v1173_v12  ;;  %s234_s22 = scalar_lea.vmem [#allocation8], %s800_s20  ;;  %s819_s10 = sshll.u32 %s1156_s15, 8 }
  0x71   : > { %887 = vmatprep.subr.bf16.mxu0 %v886_v3  ;;  %v243_v9 = vld [vmem:[%s204_s21 + $0x30] sm:$0xff]  ;;  %v244_v10 = vld [vmem:[%s204_s21 + $0x38] sm:$0xff]  ;;  %v245_v17 = vld [vmem:[#allocation5] sm:$0xf]  ;;  %s681_s25 = sshll.u32 %s234_s22, 4  ;;  %s1425_s9 = scalar_lea.hbm %s1477_s3, %s819_s10  ;;  %s1420_s25 = int_to_ptr.vmem [resolvable:$true] %s681_s25 }
  0x72   : > { %889 = vmatpush3.bf16.msra.mxu0 %v886_v3  ;;  %s666_s18 = scalar_lea.sflag [#allocation4], %s1390_s28  ;;  %s1078_s19 = scalar_lea.vmem %s1420_s25, 256 }
  0x73   : > { %p1079_p3 = scmp.ne.s32.totalorder %s1420_s25, %s1078_s19  ;;  %p1498_p10 = scmp.ne.s32.totalorder %s1487_s23, 0 }
  0x74   : > { %s1174_s15 = smov [#allocation8]  }
  0x75   : > { %847 = vmatmul.mubr.msk.f32.vlgmr.msra.gmra.mrb[0].mxu0 %vm248_vm0, %v238_v4  ;;  %p1080_p11 = pnand %p1079_p3, %p1498_p10  ;;  %s1082_s27 = sshll.u32 %s1174_s15, 4  ;;  %s1083_s27 = int_to_ptr.vmem [resolvable:$false] %s1082_s27 }
  0x76   : > { %849 = vmatprep.mubr.msk.f32.mxu0 %vm248_vm0, %v239_v5  ;;  %s1084_s5 = scalar_lea.vmem %s1083_s27, 512  ;;  %p1085_p0 = scmp.lt.s32.totalorder %s1420_s25, %s1083_s27 }
  0x77   : > { %p1081_p1 = pneg %p1080_p11  ;;  %p1086_p6 = scmp.lt.s32.totalorder %s1084_s5, %s1078_s19 }
  0x79   : > { %850 = vmatmul.mubr.msk.f32.gmra.mrb[2].mxu0 %vm248_vm0, %v240_v6  ;;  %p1087_p9 = por %p1086_p6, %p1085_p0 }
  0x7a   : > { %852 = vmatprep.mubr.msk.f32.mxu0 %vm248_vm0, %v241_v7 }
  0x7b   : > { %p1088_p8 = pnand %p1087_p9, %p1081_p1 }
  0x7d   : > { %853 = vmatmul.mubr.msk.f32.gmra.mrb[4].mxu0 %vm248_vm0, %v242_v8 }
  0x7e   : > { %855 = vmatprep.mubr.msk.f32.mxu0 %vm248_vm0, %v243_v9 }
  0x81   : > { %856 = vmatmul.mubr.msk.f32.gmra.mrb[6].mxu0 %vm248_vm0, %v244_v10 }
 0x148   : > { %v848_v13 = vpop.f32.mrb[0].mxu0 }
 0x149   : > { %v339_v14 = vpop.f32.mrb[1].mxu0 }
 0x14a   : > { %v891_v15 = vpack.c.bf16 %v848_v13, %v339_v14 }
 0x14c   : > { %v851_v16 = vpop.f32.mrb[2].mxu0  ;;  %892 = vmatpush3.bf16.msra.mxu1 %v891_v15 }
 0x14d   : > { %v349_v18 = vpop.f32.mrb[3].mxu0  ;;  %893 = vmatprep.subr.bf16.mxu1 %v1171_v11 }
 0x14e   : > { %v894_v19 = vpack.c.bf16 %v851_v16, %v349_v18 }
 0x14f   : > { %863 = vmatmul.mubr.msk.f32.vlgmr.msra.gmra.mrb[0].mxu1 %vm248_vm0, %v245_v17 }
 0x150   : > { %v854_v20 = vpop.f32.mrb[4].mxu0  ;;  %895 = vmatpush3.bf16.msra.mxu1 %v894_v19  ;;  %869 = vmatprep.mubr.msk.f32.mxu1 %vm1172_vm1, %v1173_v12 }
 0x151   : > { %v359_v21 = vpop.f32.mrb[5].mxu0  ;;  %896 = vmatprep.subr.bf16.mxu1 %v1171_v11 }
 0x152   : > { %v897_v22 = vpack.c.bf16 %v854_v20, %v359_v21 }
 0x153   : > { %870 = vmatmul.mubr.msk.f32.vlgmr.msra.gmra.mrb[2].mxu1 %vm248_vm0, %v245_v17 }
 0x154   : > { %v857_v23 = vpop.f32.mrb[6].mxu0  ;;  %898 = vmatpush3.bf16.msra.mxu1 %v897_v22  ;;  %876 = vmatprep.mubr.msk.f32.mxu1 %vm1172_vm1, %v1173_v12 }
 0x155   : > { %v369_v24 = vpop.f32.mrb[7].mxu0  ;;  %899 = vmatprep.subr.bf16.mxu1 %v1171_v11 }
 0x156   : > { %v900_v25 = vpack.c.bf16 %v857_v23, %v369_v24 }
 0x157   : > { %877 = vmatmul.mubr.msk.f32.vlgmr.msra.gmra.mrb[4].mxu1 %vm248_vm0, %v245_v17 }
 0x158   : > { %901 = vmatpush3.bf16.msra.mxu1 %v900_v25  ;;  %883 = vmatprep.mubr.msk.f32.mxu1 %vm1172_vm1, %v1173_v12 }
 0x15b   : > { %884 = vmatmul.mubr.msk.f32.vlgmr.msra.gmra.mrb[6].mxu1 %vm248_vm0, %v245_v17 }
 0x222   : > { %v447_v26 = vpop.f32.mrb[0].mxu1 }
 0x223   : > { %661 = vst [vmem:[%s234_s22] sm:$0xf] %v447_v26  ;;  %v864_v27 = vpop.f32.mrb[1].mxu1 }
 0x226   : > { %v517_v28 = vpop.f32.mrb[2].mxu1 }
 0x227   : > { %662 = vst [vmem:[%s234_s22 + $0x4] sm:$0xf] %v517_v28  ;;  %v871_v29 = vpop.f32.mrb[3].mxu1 }
 0x22a   : > { %v587_v30 = vpop.f32.mrb[4].mxu1 }
 0x22b   : > { %663 = vst [vmem:[%s234_s22 + $0x8] sm:$0xf] %v587_v30  ;;  %v878_v31 = vpop.f32.mrb[5].mxu1 }
 0x22e   : > { %v657_v32 = vpop.f32.mrb[6].mxu1 }
 0x22f   : > { %664 = vst [vmem:[%s234_s22 + $0xc] sm:$0xf] %v657_v32  ;;  %v885_v33 = vpop.f32.mrb[7].mxu1 }
 0x230   : > { %1091 = shalt.err (!%p1088_p8)
}
 0x231   : > { %s1092_s30 = scalar_lea.hbm %s1425_s9, 256  ;;  %s1096_s4 = scalar_lea.hbm %s1477_s3, 512 }
 0x232   : > { %p1093_p13 = scmp.ne.s32.totalorder %s1425_s9, %s1092_s30  ;;  %p1097_p7 = scmp.lt.u32.totalorder %s1425_s9, %s1477_s3 }
 0x233   : > { %p1098_p12 = scmp.lt.u32.totalorder %s1096_s4, %s1092_s30  ;;  %p1100_p3 = scmp.lt.u32.totalorder %s1092_s30, %s1425_s9 }
 0x234   : > { %p1094_p4 = pnand %p1093_p13, %p1498_p10 }
 0x235   : > { %p1099_p2 = por %p1098_p12, %p1097_p7 }
 0x236   : > { %p1095_p5 = pneg %p1094_p4 }
 0x237   : > { %p1101_p11 = por %p1100_p3, %p1099_p2 }
 0x239   : > { %p1102_p1 = pnand %p1101_p11, %p1095_p5 }
 0x23b   : > { %1105 = shalt.err (!%p1102_p1)
}
 0x23c   : > { %s1175_s22 = smov 64   ;;  %s1176_s10 = smov 4  }
 0x23d   : > { %912 = dma.vmem_to_hbm [thread:$0]  (%p1498_p10), %s1420_s25, 256, %s1425_s9, %s666_s18, %s1175_s22, %s1175_s22, %s1176_s10  }
 0x23e PF: > { %s696_s11 = sand.u32 1, %s1144_s12   ;;  %p1499_p0 = scmp.ne.s32.totalorder %s1488_s24, 0 }
 0x23f   : > { %p1500_p6 = scmp.ge.s32.totalorder %s1164_s17, 2  ;;  %s697_s7 = scalar_lea.sflag [#allocation4], %s696_s11 }
 0x241   : > { %p926_p9 = pnand %p1500_p6, %p1499_p0 }
 0x243   : > { %1139 = dma.done.wait (!%p926_p9), %s697_s7, 256  }
 0x244   : > { %1141 = vsyncadd (!%p926_p9), %s697_s7, 4294967040  ;;  %s20_s17 = sadd.s32 1, %s1164_s17   ;;  %s1501_s12 = smov %s1148_s13 }
 0x245   : > { %p17_p8 = scmp.ge.s32.totalorder %s20_s17, 4   ;;  %s1502_s13 = smov %s1152_s14 }
 0x246   : > { %s1503_s14 = smov %s1385_s6  ;;  %s1504_s15 = smov %s1160_s16 }
 0x247   : > { %s1505_s16 = smov %s1507_s26  ;;  %19 = sbr.rel (!%p17_p8) target bundleno = 7 (0x7), region = 85 }
 0x24e   :  { %702 = vsyncpa [#allocation3], 1 }
 0x24f   :  { %704 = vsyncpa [#allocation3 + $0x1], 1 }
 0x250   :  { %705 = vsyncpa [#allocation6], 1 }
 0x251   :  { %706 = vsyncpa [#allocation4], 1 }
 0x252   :  { %708 = vsyncpa [#allocation4 + $0x1], 1 }

</bundles_post_ra>
